<compile_context>
chip_gen: v5e
topology: v5e:2x2
jax: 0.10.0
libtpu: 0.0.40
codegen_flags: <defaults>
</compile_context>

<pallas_src>
import jax
import jax.numpy as jnp
from jax.experimental import pallas as pl
from jax.experimental.pallas import tpu as pltpu

# True / padded (lane-aligned) hidden sizes.
H1, H2 = 400, 300
H1_PAD, H2_PAD = 512, 384
LANE = 128
SUBLANE = 8


def _round_up(n, m):
    return ((n + m - 1) // m) * m


def make_actor_kernel(max_action: float):
    def actor_kernel(x_ref, mean_ref, invstd_ref,
                     w1_ref, b1_ref, w2_ref, b2_ref, w3_ref, b3_ref,
                     o_ref):
        # Normalize in f32 on the VPU, then cast once to bf16 for the MXU.
        # NOTE: padded batch rows become (0 - mean) * inv_std -- finite
        # garbage that the wrapper slices off; nothing here reduces over the
        # batch axis, so this is harmless.  (Very small xstd would amplify
        # bf16 quantization of the normalized x; acceptable per tolerance.)
        x = ((x_ref[...] - mean_ref[...]) * invstd_ref[...]).astype(jnp.bfloat16)

        # Layer 1: Linear(obs, 400 [padded 512]) + ReLU.
        # bf16 operands, f32 MXU accumulate.  Bias+ReLU in f32 (v5e-safe),
        # result stored as bf16 to halve live-activation / spill traffic.
        h1 = jnp.dot(x, w1_ref[...], preferred_element_type=jnp.float32)
        h1 = jnp.maximum(h1 + b1_ref[...], 0.0).astype(jnp.bfloat16)

        # Layer 2: Linear(400, 300 [padded 384]) + ReLU.
        h2 = jnp.dot(h1, w2_ref[...], preferred_element_type=jnp.float32)
        h2 = jnp.maximum(h2 + b2_ref[...], 0.0).astype(jnp.bfloat16)

        # Layer 3: Linear(300, action_dim [padded 128]) with scaled tanh.
        h3 = jnp.dot(h2, w3_ref[...], preferred_element_type=jnp.float32)
        o_ref[...] = (max_action * jnp.tanh(h3 + b3_ref[...])).astype(o_ref.dtype)

    return actor_kernel


def pad_actor_params(params, action_dim):
    """Zero-pad weights to lane-aligned shapes; store weights as bf16."""
    w1, b1, w2, b2, w3, b3 = params
    obs_dim = w1.shape[0]
    act_pad = _round_up(action_dim, LANE)

    # NOTE: if obs_dim were in the hundreds and not a multiple of 128, we
    # would also zero-pad the obs axis of x/xmean/xstd/w1 here; for small
    # DDPG obs dims (e.g. 16) it is not worth it.
    w1p = jnp.zeros((obs_dim, H1_PAD), jnp.float32).at[:, :H1].set(w1).astype(jnp.bfloat16)
    b1p = jnp.zeros((1, H1_PAD), jnp.float32).at[:, :H1].set(b1)
    w2p = jnp.zeros((H1_PAD, H2_PAD), jnp.float32).at[:H1, :H2].set(w2).astype(jnp.bfloat16)
    b2p = jnp.zeros((1, H2_PAD), jnp.float32).at[:, :H2].set(b2)
    w3p = jnp.zeros((H2_PAD, act_pad), jnp.float32).at[:H2, :action_dim].set(w3).astype(jnp.bfloat16)
    b3p = jnp.zeros((1, act_pad), jnp.float32).at[:, :action_dim].set(b3)
    return (w1p, b1p, w2p, b2p, w3p, b3p)


def precompute_norm_stats(xmean, xstd):
    """One-time prep: inv_std = 1/xstd (static dataset statistic).
    No epsilon, matching the PyTorch reference (assumes xstd > 0)."""
    return xmean.astype(jnp.float32), (1.0 / xstd).astype(jnp.float32)


def _choose_batch_tiling(batch, tb_max):
    """Pick (padded batch, batch tile)."""
    if batch >= 2 * tb_max:
        # Large batch: big tiles amortize the ~0.35us per-grid-step overhead;
        # grid >= 2 so both v7x TensorCores get work.
        tb = tb_max
        return _round_up(batch, tb), tb
    if batch >= 2 * LANE:
        # Medium batch: exactly two 128-aligned tiles -> megacore-shardable
        # on v7x, and each tile maps cleanly onto the v5e 128-wide MXU.
        tb = _round_up(-(-batch // 2), LANE)
        return 2 * tb, tb
    # Tiny (rollout) batch: single 8-sublane-aligned tile.
    b_pad = _round_up(batch, SUBLANE)
    return b_pad, b_pad


def actor_forward(x, xmean, xinvstd, padded_params, max_action, *, action_dim,
                  tb_max=1024):
    """x: (B, obs_dim) float32. Returns (B, action_dim) float32."""
    w1p, b1p, w2p, b2p, w3p, b3p = padded_params
    batch, obs_dim = x.shape
    act_pad = w3p.shape[1]

    b_pad, tb = _choose_batch_tiling(batch, tb_max)
    if b_pad != batch:
        x = jnp.zeros((b_pad, obs_dim), x.dtype).at[:batch].set(x)
    grid = (b_pad // tb,)

    def resident(arr):
        # Constant index_map -> DMA'd once and VMEM-resident across batch
        # tiles; single-buffered so we don't allocate two copies of each.
        return pl.BlockSpec(arr.shape, lambda i: (0, 0),
                            pipeline_mode=pl.Buffered(1))

    in_specs = [
        pl.BlockSpec((tb, obs_dim), lambda i: (i, 0)),   # x: streamed over batch
        resident(xmean), resident(xinvstd),
        resident(w1p), resident(b1p),
        resident(w2p), resident(b2p),
        resident(w3p), resident(b3p),
    ]
    out_specs = pl.BlockSpec((tb, act_pad), lambda i: (i, 0))

    flops = 2 * b_pad * (obs_dim * H1_PAD + H1_PAD * H2_PAD + H2_PAD * act_pad)
    bytes_accessed = (
        b_pad * obs_dim * 4                               # x
        + (xmean.size + xinvstd.size) * 4
        + (w1p.size + w2p.size + w3p.size) * 2            # bf16 weights
        + (b1p.size + b2p.size + b3p.size) * 4
        + b_pad * act_pad * 4)                            # out

    out = pl.pallas_call(
        make_actor_kernel(float(max_action)),
        out_shape=jax.ShapeDtypeStruct((b_pad, act_pad), jnp.float32),
        grid_spec=pltpu.PrefetchScalarGridSpec(
            num_scalar_prefetch=0,
            grid=grid,
            in_specs=in_specs,
            out_specs=out_specs,
        ),
        compiler_params=pltpu.CompilerParams(
            dimension_semantics=("parallel",)),
        cost_estimate=pl.CostEstimate(
            flops=flops,
            transcendentals=b_pad * act_pad,
            bytes_accessed=bytes_accessed),
    )(x, xmean, xinvstd, w1p, b1p, w2p, b2p, w3p, b3p)

    return out[:batch, :action_dim]


def init_actor_params(key, obs_dim, action_dim):
    """Deterministic synthetic init. Weights stored as (in, out), f32."""
    k1, k2, k3, k4, k5, k6 = jax.random.split(key, 6)
    w1 = jax.random.normal(k1, (obs_dim, H1), jnp.float32) * 0.05
    b1 = jax.random.normal(k2, (1, H1), jnp.float32) * 0.05
    w2 = jax.random.normal(k3, (H1, H2), jnp.float32) * 0.05
    b2 = jax.random.normal(k4, (1, H2), jnp.float32) * 0.05
    w3 = jax.random.normal(k5, (H2, action_dim), jnp.float32) * 0.05
    b3 = jax.random.normal(k6, (1, action_dim), jnp.float32) * 0.05
    return (w1, b1, w2, b2, w3, b3)


def reference_forward(x, xmean, xstd, params, max_action):
    w1, b1, w2, b2, w3, b3 = params
    x = (x - xmean) / xstd
    x = jax.nn.relu(x @ w1 + b1)
    x = jax.nn.relu(x @ w2 + b2)
    return max_action * jnp.tanh(x @ w3 + b3)


if __name__ == "__main__":
    key = jax.random.PRNGKey(0)
    k_x, k_p, k_m, k_x2 = jax.random.split(key, 4)

    obs_dim = 16
    action_dim = 4
    max_action = 2.0

    xmean = jax.random.normal(k_m, (1, obs_dim), jnp.float32) * 0.1
    xstd = jnp.ones((1, obs_dim), jnp.float32) * 1.5

    params = init_actor_params(k_p, obs_dim, action_dim)
    padded_params = pad_actor_params(params, action_dim)
    xmean_p, xinvstd = precompute_norm_stats(xmean, xstd)

    # Tiny rollout-style batch (single-tile grid).
    x_small = jax.random.normal(k_x, (2, obs_dim), jnp.float32)
    out_small = jax.block_until_ready(
        actor_forward(x_small, xmean_p, xinvstd, padded_params, max_action,
                      action_dim=action_dim))
    ref_small = reference_forward(x_small, xmean, xstd, params, max_action)
    assert out_small.shape == (2, action_dim)
    # Tolerance loosened vs a pure-f32 path because the MXU uses bf16
    # operands with f32 accumulation.
    assert jnp.allclose(out_small, ref_small, atol=2e-2, rtol=2e-2), \
        "small-batch mismatch vs reference"

    # Medium batch: exercises the two-tile (dual-TensorCore-shardable) path.
    x_big = jax.random.normal(k_x2, (260, obs_dim), jnp.float32)
    out_big = jax.block_until_ready(
        actor_forward(x_big, xmean_p, xinvstd, padded_params, max_action,
                      action_dim=action_dim))
    ref_big = reference_forward(x_big, xmean, xstd, params, max_action)
    assert out_big.shape == (260, action_dim)
    assert jnp.allclose(out_big, ref_big, atol=2e-2, rtol=2e-2), \
        "medium-batch mismatch vs reference"

    print("KERNEL_OK")
</pallas_src>

<mosaic_0001>
module attributes {stable_mosaic.version = 11 : i64} {
  func.func @actor_kernel(%arg0: i32, %arg1: memref<8x16xf32, #tpu.memory_space<vmem>>, %arg2: memref<1x16xf32, #tpu.memory_space<vmem>>, %arg3: memref<1x16xf32, #tpu.memory_space<vmem>>, %arg4: memref<16x512xbf16, #tpu.memory_space<vmem>>, %arg5: memref<1x512xf32, #tpu.memory_space<vmem>>, %arg6: memref<512x384xbf16, #tpu.memory_space<vmem>>, %arg7: memref<1x384xf32, #tpu.memory_space<vmem>>, %arg8: memref<384x128xbf16, #tpu.memory_space<vmem>>, %arg9: memref<1x128xf32, #tpu.memory_space<vmem>>, %arg10: memref<8x128xf32, #tpu.memory_space<vmem>>) attributes {dimension_semantics = [#tpu.dimension_semantics<parallel>], iteration_bounds = array<i64: 1>, scalar_prefetch = 0 : i64, scratch_operands = 0 : i64, tpu.core_type = #tpu.core_type<tc>, window_params = [{transform_indices = @transform_0, window_bounds = array<i64: 8, 16>}, {pipeline_mode = #tpu.pipeline_mode<synchronous>, transform_indices = @transform_1, window_bounds = array<i64: 1, 16>}, {pipeline_mode = #tpu.pipeline_mode<synchronous>, transform_indices = @transform_2, window_bounds = array<i64: 1, 16>}, {pipeline_mode = #tpu.pipeline_mode<synchronous>, transform_indices = @transform_3, window_bounds = array<i64: 16, 512>}, {pipeline_mode = #tpu.pipeline_mode<synchronous>, transform_indices = @transform_4, window_bounds = array<i64: 1, 512>}, {pipeline_mode = #tpu.pipeline_mode<synchronous>, transform_indices = @transform_5, window_bounds = array<i64: 512, 384>}, {pipeline_mode = #tpu.pipeline_mode<synchronous>, transform_indices = @transform_6, window_bounds = array<i64: 1, 384>}, {pipeline_mode = #tpu.pipeline_mode<synchronous>, transform_indices = @transform_7, window_bounds = array<i64: 384, 128>}, {pipeline_mode = #tpu.pipeline_mode<synchronous>, transform_indices = @transform_8, window_bounds = array<i64: 1, 128>}, {transform_indices = @transform_9, window_bounds = array<i64: 8, 128>}]} {
    %c0 = arith.constant 0 : index
    %c0_0 = arith.constant 0 : index
    %0 = vector.load %arg1[%c0, %c0_0] : memref<8x16xf32, #tpu.memory_space<vmem>>, vector<8x16xf32>
    %c0_1 = arith.constant 0 : index
    %c0_2 = arith.constant 0 : index
    %1 = vector.load %arg2[%c0_1, %c0_2] : memref<1x16xf32, #tpu.memory_space<vmem>>, vector<1x16xf32>
    %2 = vector.broadcast %1 : vector<1x16xf32> to vector<8x16xf32>
    %3 = arith.subf %0, %2 : vector<8x16xf32>
    %c0_3 = arith.constant 0 : index
    %c0_4 = arith.constant 0 : index
    %4 = vector.load %arg3[%c0_3, %c0_4] : memref<1x16xf32, #tpu.memory_space<vmem>>, vector<1x16xf32>
    %5 = vector.broadcast %4 : vector<1x16xf32> to vector<8x16xf32>
    %6 = arith.mulf %3, %5 : vector<8x16xf32>
    %7 = arith.truncf %6 : vector<8x16xf32> to vector<8x16xbf16>
    %c0_5 = arith.constant 0 : index
    %c0_6 = arith.constant 0 : index
    %8 = vector.load %arg4[%c0_5, %c0_6] : memref<16x512xbf16, #tpu.memory_space<vmem>>, vector<16x512xbf16>
    %cst = arith.constant dense<0.000000e+00> : vector<8x512xf32>
    %9 = tpu.matmul %7, %8, %cst {dimension_numbers = #tpu.dot_dimension_numbers<[1], [0], [0], [1], [0, 0, 1, 1], [], []>} : vector<8x16xbf16>, vector<16x512xbf16>, vector<8x512xf32> -> vector<8x512xf32>
    %c0_7 = arith.constant 0 : index
    %c0_8 = arith.constant 0 : index
    %10 = vector.load %arg5[%c0_7, %c0_8] : memref<1x512xf32, #tpu.memory_space<vmem>>, vector<1x512xf32>
    %11 = vector.broadcast %10 : vector<1x512xf32> to vector<8x512xf32>
    %12 = arith.addf %9, %11 : vector<8x512xf32>
    %cst_9 = arith.constant 0.000000e+00 : f32
    %13 = vector.broadcast %cst_9 : f32 to vector<8x512xf32>
    %14 = arith.maximumf %12, %13 : vector<8x512xf32>
    %15 = arith.truncf %14 : vector<8x512xf32> to vector<8x512xbf16>
    %c0_10 = arith.constant 0 : index
    %c0_11 = arith.constant 0 : index
    %16 = vector.load %arg6[%c0_10, %c0_11] : memref<512x384xbf16, #tpu.memory_space<vmem>>, vector<512x384xbf16>
    %cst_12 = arith.constant dense<0.000000e+00> : vector<8x384xf32>
    %17 = tpu.matmul %15, %16, %cst_12 {dimension_numbers = #tpu.dot_dimension_numbers<[1], [0], [0], [1], [0, 0, 1, 1], [], []>} : vector<8x512xbf16>, vector<512x384xbf16>, vector<8x384xf32> -> vector<8x384xf32>
    %c0_13 = arith.constant 0 : index
    %c0_14 = arith.constant 0 : index
    %18 = vector.load %arg7[%c0_13, %c0_14] : memref<1x384xf32, #tpu.memory_space<vmem>>, vector<1x384xf32>
    %19 = vector.broadcast %18 : vector<1x384xf32> to vector<8x384xf32>
    %20 = arith.addf %17, %19 : vector<8x384xf32>
    %cst_15 = arith.constant 0.000000e+00 : f32
    %21 = vector.broadcast %cst_15 : f32 to vector<8x384xf32>
    %22 = arith.maximumf %20, %21 : vector<8x384xf32>
    %23 = arith.truncf %22 : vector<8x384xf32> to vector<8x384xbf16>
    %c0_16 = arith.constant 0 : index
    %c0_17 = arith.constant 0 : index
    %24 = vector.load %arg8[%c0_16, %c0_17] : memref<384x128xbf16, #tpu.memory_space<vmem>>, vector<384x128xbf16>
    %cst_18 = arith.constant dense<0.000000e+00> : vector<8x128xf32>
    %25 = tpu.matmul %23, %24, %cst_18 {dimension_numbers = #tpu.dot_dimension_numbers<[1], [0], [0], [1], [0, 0, 1, 1], [], []>} : vector<8x384xbf16>, vector<384x128xbf16>, vector<8x128xf32> -> vector<8x128xf32>
    %c0_19 = arith.constant 0 : index
    %c0_20 = arith.constant 0 : index
    %26 = vector.load %arg9[%c0_19, %c0_20] : memref<1x128xf32, #tpu.memory_space<vmem>>, vector<1x128xf32>
    %27 = vector.broadcast %26 : vector<1x128xf32> to vector<8x128xf32>
    %28 = arith.addf %25, %27 : vector<8x128xf32>
    %29 = math.tanh %28 : vector<8x128xf32>
    %cst_21 = arith.constant 2.000000e+00 : f32
    %30 = vector.broadcast %cst_21 : f32 to vector<8x128xf32>
    %31 = arith.mulf %30, %29 : vector<8x128xf32>
    %c0_22 = arith.constant 0 : index
    %c0_23 = arith.constant 0 : index
    %32 = vector.load %arg10[%c0_22, %c0_23] : memref<8x128xf32, #tpu.memory_space<vmem>>, vector<8x128xf32>
    tpu.vector_store %arg10[%c0_22, %c0_23], %31 {strides = array<i32>} : memref<8x128xf32, #tpu.memory_space<vmem>>, vector<8x128xf32>,
    return
  }
  func.func @transform_0(%arg0: i32) -> (i32, i32) {
    %c0_i32 = arith.constant 0 : i32
    %c0_i32_0 = arith.constant 0 : i32
    return %arg0, %c0_i32 : i32, i32
  }
  func.func @transform_1(%arg0: i32) -> (i32, i32) {
    %c0_i32 = arith.constant 0 : i32
    %c0_i32_0 = arith.constant 0 : i32
    %c0_i32_1 = arith.constant 0 : i32
    return %c0_i32, %c0_i32_0 : i32, i32
  }
  func.func @transform_2(%arg0: i32) -> (i32, i32) {
    %c0_i32 = arith.constant 0 : i32
    %c0_i32_0 = arith.constant 0 : i32
    %c0_i32_1 = arith.constant 0 : i32
    return %c0_i32, %c0_i32_0 : i32, i32
  }
  func.func @transform_3(%arg0: i32) -> (i32, i32) {
    %c0_i32 = arith.constant 0 : i32
    %c0_i32_0 = arith.constant 0 : i32
    %c0_i32_1 = arith.constant 0 : i32
    return %c0_i32, %c0_i32_0 : i32, i32
  }
  func.func @transform_4(%arg0: i32) -> (i32, i32) {
    %c0_i32 = arith.constant 0 : i32
    %c0_i32_0 = arith.constant 0 : i32
    %c0_i32_1 = arith.constant 0 : i32
    return %c0_i32, %c0_i32_0 : i32, i32
  }
  func.func @transform_5(%arg0: i32) -> (i32, i32) {
    %c0_i32 = arith.constant 0 : i32
    %c0_i32_0 = arith.constant 0 : i32
    %c0_i32_1 = arith.constant 0 : i32
    return %c0_i32, %c0_i32_0 : i32, i32
  }
  func.func @transform_6(%arg0: i32) -> (i32, i32) {
    %c0_i32 = arith.constant 0 : i32
    %c0_i32_0 = arith.constant 0 : i32
    %c0_i32_1 = arith.constant 0 : i32
    return %c0_i32, %c0_i32_0 : i32, i32
  }
  func.func @transform_7(%arg0: i32) -> (i32, i32) {
    %c0_i32 = arith.constant 0 : i32
    %c0_i32_0 = arith.constant 0 : i32
    %c0_i32_1 = arith.constant 0 : i32
    return %c0_i32, %c0_i32_0 : i32, i32
  }
  func.func @transform_8(%arg0: i32) -> (i32, i32) {
    %c0_i32 = arith.constant 0 : i32
    %c0_i32_0 = arith.constant 0 : i32
    %c0_i32_1 = arith.constant 0 : i32
    return %c0_i32, %c0_i32_0 : i32, i32
  }
  func.func @transform_9(%arg0: i32) -> (i32, i32) {
    %c0_i32 = arith.constant 0 : i32
    %c0_i32_0 = arith.constant 0 : i32
    return %arg0, %c0_i32 : i32, i32
  }
}

</mosaic_0001>

<bundles_post_ra>
// kernel: tpu_custom_call.1
= control target key start
LH: loop header
LB: loop body
LE: loop exit
PB: predicated region body
PF: predicated region fallthrough
CT: control target
= control target key end

     0   :  { %14 = vsyncpa [#allocation3], 0  ;;  %s2249_s0 = inlined_call_operand.hbm [shape: f32[8,16], index: 0, kind: input, shape index: {}]   ;;  %s2250_s1 = inlined_call_operand.hbm [shape: f32[1,16], index: 1, kind: input, shape index: {}]   ;;  %s2251_s2 = inlined_call_operand.vmem [shape: f32[1,16], index: 2, kind: input, shape index: {}]   ;;  %s2252_s3 = inlined_call_operand.hbm [shape: bf16[16,512], index: 3, kind: input, shape index: {}]   ;;  %s2253_s4 = inlined_call_operand.hbm [shape: f32[1,512], index: 4, kind: input, shape index: {}]   ;;  %s2254_s5 = inlined_call_operand.hbm [shape: bf16[512,384], index: 5, kind: input, shape index: {}]   ;;  %s2255_s6 = inlined_call_operand.vmem [shape: f32[1,384], index: 6, kind: input, shape index: {}]   ;;  %s2256_s7 = inlined_call_operand.hbm [shape: bf16[384,128], index: 7, kind: input, shape index: {}]   ;;  %s2257_s8 = inlined_call_operand.vmem [shape: f32[1,128], index: 8, kind: input, shape index: {}]   ;;  %s2258_s9 = inlined_call_operand.hbm [shape: f32[8,128], index: 9, kind: output, shape index: {}]  }
   0x1   :  { %15 = vsyncpa [#allocation6], 0 }
   0x2   :  { %16 = vsyncpa [#allocation9], 0 }
   0x3   :  { %17 = vsyncpa [#allocation12], 0  ;;  %s35_s11 = sshll.u32 %s2250_s1, 4  ;;  %s36_s11 = int_to_ptr.hbm [resolvable:$true] %s35_s11 }
   0x4   :  { %18 = vsyncpa [#allocation4], 0  ;;  %s2120_s12 = smov [#allocation5]   ;;  %s61_s16 = sshll.u32 %s2253_s4, 4  ;;  %s62_s16 = int_to_ptr.hbm [resolvable:$true] %s61_s16 }
   0x5   :  { %s37_s13 = sshll.u32 %s2120_s12, 4  ;;  %s2121_s17 = smov [#allocation8]   ;;  %s38_s13 = int_to_ptr.vmem [resolvable:$true] %s37_s13 }
   0x6   :  { %40 = dma.hbm_to_vmem [thread:$0]  %s36_s11, 16, %s38_s13, [#allocation6]  }
   0x7   :  { %s63_s18 = sshll.u32 %s2121_s17, 4  ;;  %s24_s21 = sshll.u32 %s2249_s0, 4  ;;  %s64_s18 = int_to_ptr.vmem [resolvable:$true] %s63_s18  ;;  %s25_s21 = int_to_ptr.hbm [resolvable:$true] %s24_s21 }
   0x8   :  { %66 = dma.hbm_to_vmem [thread:$0]  %s62_s16, 64, %s64_s18, [#allocation9]  }
   0x9   :  { %s47_s23 = sshll.u32 %s2252_s3, 4  ;;  %s2122_s24 = smov [#allocation2]   ;;  %s48_s23 = int_to_ptr.hbm [resolvable:$true] %s47_s23 }
   0xa   :  { %s26_s25 = sshll.u32 %s2122_s24, 4  ;;  %s2123_s4 = smov [#allocation7]   ;;  %s27_s25 = int_to_ptr.vmem [resolvable:$true] %s26_s25 }
   0xb   :  { %29 = dma.hbm_to_vmem [thread:$0]  %s25_s21, 128, %s27_s25, [#allocation3]  }
   0xc   :  { %s49_s26 = sshll.u32 %s2123_s4, 4  ;;  %s2124_s27 = smov 256   ;;  %s50_s26 = int_to_ptr.vmem [resolvable:$true] %s49_s26 }
   0xd   :  { %s2125_s28 = smov 16   ;;  %s71_s30 = sshll.u32 %s2254_s5, 4  ;;  %s72_s30 = int_to_ptr.hbm [resolvable:$true] %s71_s30 }
   0xe   :  { %55 = dma.hbm_to_vmem [thread:$0]  %s48_s23, 512, %s50_s26, [#allocation6], %s2124_s27, %s2124_s27, %s2125_s28  }
   0xf   :  { %s2126_s10 = smov [#allocation10]   ;;  %s86_s13 = sshll.u32 %s2256_s7, 4  ;;  %s87_s13 = int_to_ptr.hbm [resolvable:$true] %s86_s13 }
  0x10   :  { %s73_s11 = sshll.u32 %s2126_s10, 4  ;;  %s2127_s14 = smov 192   ;;  %s74_s11 = int_to_ptr.vmem [resolvable:$true] %s73_s11 }
  0x11   :  { %s2128_s15 = smov 12   ;;  %s2129_s16 = smov [#allocation11]  }
  0x12   :  { %79 = dma.hbm_to_vmem [thread:$0]  %s72_s30, 12288, %s74_s11, [#allocation9], %s2127_s14, %s2127_s14, %s2128_s15  }
  0x13   :  { %s88_s17 = sshll.u32 %s2129_s16, 4  ;;  %s2130_s18 = smov 64   ;;  %s89_s17 = int_to_ptr.vmem [resolvable:$true] %s88_s17 }
  0x14   :  { %s2131_s19 = smov 4  }
  0x15   :  { %94 = dma.hbm_to_vmem [thread:$0]  %s87_s13, 3072, %s89_s17, [#allocation12], %s2130_s18, %s2130_s18, %s2131_s19  }
  0x16   :  { %2110 = dma.done.wait [#allocation3], 128  }
  0x17   :  { %2111 = vsyncadd [#allocation3], 4294967168 }
  0x18   :  { %2112 = dma.done.wait [#allocation6], 528  }
  0x19   :  { %2113 = vsyncadd [#allocation6], 4294966768 }
  0x1a   :  { %2114 = dma.done.wait [#allocation9], 12352  }
  0x1b   :  { %2115 = vsyncadd [#allocation9], 4294954944 }
  0x1c   :  { %2116 = dma.done.wait [#allocation12], 3072  }
  0x1d   :  { %2117 = vsyncadd [#allocation12], 4294964224  ;;  %v1302_v0 = vld [vmem:[#allocation7] sm:$0xf]  ;;  %v1802_v1 = vld [vmem:[#allocation7 + $0xc] sm:$0xf0] }
  0x1e   :  { %v1800_v2 = vld [vmem:[#allocation7 + $0x4] sm:$0xf]  ;;  %v1303_v3 = vor.u32 %v1802_v1, %v1302_v0  ;;  %v1304_v4 = vld [vmem:[#allocation7 + $0x10] sm:$0xf0]  ;;  %v1310_v5 = vld [vmem:[#allocation7 + $0x8] sm:$0xf] }
  0x1f   :  { %v1803_v6 = vld [vmem:[#allocation7 + $0x14] sm:$0xf0]  ;;  %v1307_v7 = vor.u32 %v1800_v2, %v1304_v4  ;;  %v1937_v10 = vld [vmem:[#allocation5] ss:$0 sm:$0xff]  ;;  %vm168_vm0 = vcmask 130048   ;;  %s2132_s1 = smov [#allocation13]  }
  0x20   :  { %v1311_v8 = vor.u32 %v1803_v6, %v1310_v5  ;;  %v122_v9 = vld [vmem:[#allocation2] sm:$0xff]  ;;  %179 = vmatpush.bf16.msra.mxu3 %v1303_v3  ;;  %v1801_v12 = vld [vmem:[#allocation7 + $0xc] sm:$0xf]  ;;  %v1847_v20 = vld [vmem:[#allocation10 + $0x158] sm:$0xf0]  ;;  %s1285_s22 = sshll.u32 %s2132_s1, 4  ;;  %s1286_s22 = int_to_ptr.vmem [resolvable:$true] %s1285_s22 }
  0x21   :  { %v1938_v11 = vld [vmem:[%s2251_s2] ss:$0 sm:$0xff]  ;;  %192 = vmatpush.bf16.msra.mxu1 %v1307_v7  ;;  %v127_v13 = vsub.f32 %v122_v9, %v1937_v10  ;;  %v1312_v14 = vld [vmem:[#allocation7 + $0x18] sm:$0xf0]  ;;  %v1502_v15 = vld [vmem:[#allocation10 + $0x168] sm:$0xf] }
  0x22   :  { %205 = vmatpush.bf16.msra.mxu2 %v1311_v8  ;;  %v1850_v16 = vld [vmem:[#allocation10 + $0x170] sm:$0xf0]  ;;  %v1315_v17 = vor.u32 %v1801_v12, %v1312_v14  ;;  %v1490_v19 = vld [vmem:[#allocation10 + $0x150] sm:$0xf]  ;;  %v1406_v21 = vld [vmem:[#allocation10 + $0xa8] sm:$0xf] }
  0x23   :  { %v1503_v18 = vor.u32 %v1850_v16, %v1502_v15  ;;  %v132_v22 = vmul.f32 %v1938_v11, %v127_v13  ;;  %v1826_v23 = vld [vmem:[#allocation10 + $0xb0] sm:$0xf0]  ;;  %v1598_v24 = vld [vmem:[#allocation10 + $0x228] sm:$0xf]  ;;  %v1491_v26 = vor.u32 %v1847_v20, %v1490_v19  ;;  %v1478_v29 = vld [vmem:[#allocation10 + $0x138] sm:$0xf] }
  0x24   :  { %v1874_v25 = vld [vmem:[#allocation10 + $0x230] sm:$0xf0]  ;;  %218 = vmatpush.bf16.msrb.mxu3 %v1315_v17  ;;  %v1407_v27 = vor.u32 %v1826_v23, %v1406_v21  ;;  %v1844_v30 = vld [vmem:[#allocation10 + $0x140] sm:$0xf0]  ;;  %v1394_v31 = vld [vmem:[#allocation10 + $0x90] sm:$0xf] }
  0x25   :  { %893 = vmatpush.bf16.msrb.mxu1 %v1503_v18  ;;  %v1599_v28 = vor.u32 %v1874_v25, %v1598_v24  ;;  %v2204_v32 = vpack.c.bf16 %v132_v22, %v132_v22  ;;  %v1823_v33 = vld [vmem:[#allocation10 + $0x98] sm:$0xf0]  ;;  %v1586_v34 = vld [vmem:[#allocation10 + $0x210] sm:$0xf]  ;;  %v1382_v38 = vld [vmem:[#allocation10 + $0x78] sm:$0xf]  ;;  %v1479_v42 = vor.u32 %v1844_v30, %v1478_v29 }
  0x26   :  { %v1871_v35 = vld [vmem:[#allocation10 + $0x218] sm:$0xf0]  ;;  %880 = vmatpush.bf16.msra.mxu0 %v1407_v27  ;;  %v1395_v36 = vor.u32 %v1823_v33, %v1394_v31  ;;  %v1820_v39 = vld [vmem:[#allocation10 + $0x80] sm:$0xf0]  ;;  %v1574_v40 = vld [vmem:[#allocation10 + $0x1f8] sm:$0xf] }
  0x27   :  { %906 = vmatpush.bf16.msrb.mxu2 %v1599_v28  ;;  %v1587_v37 = vor.u32 %v1871_v35, %v1586_v34  ;;  %1316 = vmatmul.msk.bf16.vlgmr.msra.gmra.mxu3 %vm168_vm0, %v2204_v32  ;;  %v1868_v41 = vld [vmem:[#allocation10 + $0x200] sm:$0xf0]  ;;  %v1466_v43 = vld [vmem:[#allocation10 + $0x120] sm:$0xf]  ;;  %v1841_v44 = vld [vmem:[#allocation10 + $0x128] sm:$0xf0]  ;;  %v1383_v45 = vor.u32 %v1820_v39, %v1382_v38 }
  0x28   :  { %1317 = vmatmul.msk.bf16.vlgmr.msra.gmra.mxu1 %vm168_vm0, %v2204_v32  ;;  %1318 = vmatmul.msk.bf16.vlgmr.msra.gmra.mxu2 %vm168_vm0, %v2204_v32  ;;  %v1575_v46 = vor.u32 %v1868_v41, %v1574_v40  ;;  %v1370_v47 = vld [vmem:[#allocation10 + $0x60] sm:$0xf]  ;;  %v1817_v48 = vld [vmem:[#allocation10 + $0x68] sm:$0xf0]  ;;  %v1467_v51 = vor.u32 %v1841_v44, %v1466_v43  ;;  %v1694_v52 = vld [vmem:[#allocation10 + $0x2e8] sm:$0xf] }
  0x29   :  { %894 = vmatpush.bf16.msrb.mxu1 %v1491_v26  ;;  %v1562_v49 = vld [vmem:[#allocation10 + $0x1e0] sm:$0xf]  ;;  %v1865_v50 = vld [vmem:[#allocation10 + $0x1e8] sm:$0xf0]  ;;  %v1898_v53 = vld [vmem:[#allocation10 + $0x2f0] sm:$0xf0]  ;;  %v1371_v57 = vor.u32 %v1817_v48, %v1370_v47 }
  0x2a   :  { %881 = vmatpush.bf16.msra.mxu0 %v1395_v36  ;;  %v1454_v54 = vld [vmem:[#allocation10 + $0x108] sm:$0xf]  ;;  %v1838_v55 = vld [vmem:[#allocation10 + $0x110] sm:$0xf0]  ;;  %v1695_v56 = vor.u32 %v1898_v53, %v1694_v52  ;;  %v1563_v58 = vor.u32 %v1865_v50, %v1562_v49  ;;  %v1682_v61 = vld [vmem:[#allocation10 + $0x2d0] sm:$0xf] }
  0x2b   :  { %907 = vmatpush.bf16.msrb.mxu2 %v1587_v37  ;;  %v1358_v59 = vld [vmem:[#allocation10 + $0x48] sm:$0xf]  ;;  %v1814_v60 = vld [vmem:[#allocation10 + $0x50] sm:$0xf0]  ;;  %v1895_v0 = vld [vmem:[#allocation10 + $0x2d8] sm:$0xf0]  ;;  %v1455_v1 = vor.u32 %v1838_v55, %v1454_v54 }
  0x2c   :  { %v1550_v62 = vld [vmem:[#allocation10 + $0x1c8] sm:$0xf]  ;;  %v1862_v63 = vld [vmem:[#allocation10 + $0x1d0] sm:$0xf0]  ;;  %919 = vmatpush.bf16.msra.mxu3 %v1695_v56  ;;  %v1683_v2 = vor.u32 %v1895_v0, %v1682_v61  ;;  %v1442_v3 = vld [vmem:[#allocation10 + $0xf0] sm:$0xf]  ;;  %v1359_v5 = vor.u32 %v1814_v60, %v1358_v59 }
  0x2d   :  { %895 = vmatpush.bf16.msrb.mxu1 %v1479_v42  ;;  %v1835_v4 = vld [vmem:[#allocation10 + $0xf8] sm:$0xf0]  ;;  %v1551_v6 = vor.u32 %v1862_v63, %v1550_v62  ;;  %v1346_v7 = vld [vmem:[#allocation10 + $0x30] sm:$0xf]  ;;  %v1670_v8 = vld [vmem:[#allocation10 + $0x2b8] sm:$0xf] }
  0x2e   :  { %882 = vmatpush.bf16.msra.mxu0 %v1383_v45  ;;  %v1892_v9 = vld [vmem:[#allocation10 + $0x2c0] sm:$0xf0]  ;;  %v1811_v10 = vld [vmem:[#allocation10 + $0x38] sm:$0xf0]  ;;  %v1538_v11 = vld [vmem:[#allocation10 + $0x1b0] sm:$0xf]  ;;  %v1443_v13 = vor.u32 %v1835_v4, %v1442_v3 }
  0x2f   :  { %908 = vmatpush.bf16.msrb.mxu2 %v1575_v46  ;;  %v1859_v12 = vld [vmem:[#allocation10 + $0x1b8] sm:$0xf0]  ;;  %v1430_v14 = vld [vmem:[#allocation10 + $0xd8] sm:$0xf]  ;;  %v1671_v15 = vor.u32 %v1892_v9, %v1670_v8  ;;  %v1832_v16 = vld [vmem:[#allocation10 + $0xe0] sm:$0xf0]  ;;  %v1347_v19 = vor.u32 %v1811_v10, %v1346_v7 }
  0x30   :  { %920 = vmatpush.bf16.msra.mxu3 %v1683_v2  ;;  %v1658_v17 = vld [vmem:[#allocation10 + $0x2a0] sm:$0xf]  ;;  %v1889_v18 = vld [vmem:[#allocation10 + $0x2a8] sm:$0xf0]  ;;  %v1539_v20 = vor.u32 %v1859_v12, %v1538_v11  ;;  %v1334_v21 = vld [vmem:[#allocation10 + $0x18] sm:$0xf]  ;;  %v1431_v25 = vor.u32 %v1832_v16, %v1430_v14 }
  0x31   :  { %896 = vmatpush.bf16.msrb.mxu1 %v1467_v51  ;;  %v1808_v22 = vld [vmem:[#allocation10 + $0x20] sm:$0xf0]  ;;  %v1526_v23 = vld [vmem:[#allocation10 + $0x198] sm:$0xf]  ;;  %v1418_v26 = vld [vmem:[#allocation10 + $0xc0] sm:$0xf]  ;;  %v1659_v28 = vor.u32 %v1889_v18, %v1658_v17 }
  0x32   :  { %883 = vmatpush.bf16.msra.mxu0 %v1371_v57  ;;  %v1856_v24 = vld [vmem:[#allocation10 + $0x1a0] sm:$0xf0]  ;;  %v1829_v27 = vld [vmem:[#allocation10 + $0xc8] sm:$0xf0]  ;;  %v1646_v30 = vld [vmem:[#allocation10 + $0x288] sm:$0xf]  ;;  %v1335_v34 = vor.u32 %v1808_v22, %v1334_v21 }
  0x33   :  { %909 = vmatpush.bf16.msrb.mxu2 %v1563_v58  ;;  %v1849_v29 = vld [vmem:[#allocation10 + $0x16c] sm:$0xf]  ;;  %v1886_v31 = vld [vmem:[#allocation10 + $0x290] sm:$0xf0]  ;;  %v1504_v33 = vld [vmem:[#allocation10 + $0x174] sm:$0xf0]  ;;  %v1527_v35 = vor.u32 %v1856_v24, %v1526_v23  ;;  %v1419_v40 = vor.u32 %v1829_v27, %v1418_v26 }
  0x34   :  { %921 = vmatpush.bf16.msra.mxu3 %v1671_v15  ;;  %v1322_v36 = vld [vmem:[#allocation10] sm:$0xf]  ;;  %v1805_v37 = vld [vmem:[#allocation10 + $0x8] sm:$0xf0]  ;;  %v1408_v41 = vld [vmem:[#allocation10 + $0xb4] sm:$0xf0]  ;;  %v1647_v44 = vor.u32 %v1886_v31, %v1646_v30  ;;  %v1507_v45 = vor.u32 %v1849_v29, %v1504_v33 }
  0x35   :  { %897 = vmatpush.bf16.msrb.mxu1 %v1455_v1  ;;  %v1853_v38 = vld [vmem:[#allocation10 + $0x188] sm:$0xf0]  ;;  %v1600_v43 = vld [vmem:[#allocation10 + $0x234] sm:$0xf0]  ;;  %v1634_v46 = vld [vmem:[#allocation10 + $0x270] sm:$0xf]  ;;  %v1323_v50 = vor.u32 %v1805_v37, %v1322_v36 }
  0x36   :  { %884 = vmatpush.bf16.msra.mxu0 %v1359_v5  ;;  %v1825_v39 = vld [vmem:[#allocation10 + $0xac] sm:$0xf]  ;;  %v1883_v47 = vld [vmem:[#allocation10 + $0x278] sm:$0xf0]  ;;  %v1846_v48 = vld [vmem:[#allocation10 + $0x154] sm:$0xf] }
  0x37   :  { %910 = vmatpush.bf16.msrb.mxu2 %v1551_v6  ;;  %1319 = vmatmul.msk.bf16.vlgmr.msrb.gmra.mxu3 %vm168_vm0, %v2204_v32  ;;  %v1514_v32 = vld [vmem:[#allocation10 + $0x180] sm:$0xf]  ;;  %v1873_v42 = vld [vmem:[#allocation10 + $0x22c] sm:$0xf]  ;;  %v1411_v52 = vor.u32 %v1825_v39, %v1408_v41  ;;  %v1822_v54 = vld [vmem:[#allocation10 + $0x94] sm:$0xf]  ;;  %v1635_v58 = vor.u32 %v1883_v47, %v1634_v46 }
  0x38   :  { %922 = vmatpush.bf16.msra.mxu3 %v1659_v28  ;;  %v1492_v49 = vld [vmem:[#allocation10 + $0x15c] sm:$0xf0]  ;;  %v1515_v51 = vor.u32 %v1853_v38, %v1514_v32  ;;  %v1603_v53 = vor.u32 %v1873_v42, %v1600_v43  ;;  %v1870_v56 = vld [vmem:[#allocation10 + $0x214] sm:$0xf]  ;;  %v1622_v60 = vld [vmem:[#allocation10 + $0x258] sm:$0xf] }
  0x39   :  { %898 = vmatpush.bf16.msrb.mxu1 %v1443_v13  ;;  %v1396_v55 = vld [vmem:[#allocation10 + $0x9c] sm:$0xf0]  ;;  %v1495_v59 = vor.u32 %v1846_v48, %v1492_v49  ;;  %v1880_v61 = vld [vmem:[#allocation10 + $0x260] sm:$0xf0]  ;;  %v1843_v62 = vld [vmem:[#allocation10 + $0x13c] sm:$0xf] }
  0x3a   :  { %885 = vmatpush.bf16.msra.mxu0 %v1347_v19  ;;  %v1588_v57 = vld [vmem:[#allocation10 + $0x21c] sm:$0xf0]  ;;  %v1480_v63 = vld [vmem:[#allocation10 + $0x144] sm:$0xf0]  ;;  %v1399_v0 = vor.u32 %v1822_v54, %v1396_v55  ;;  %v1819_v2 = vld [vmem:[#allocation10 + $0x7c] sm:$0xf]  ;;  %v1623_v6 = vor.u32 %v1880_v61, %v1622_v60 }
  0x3b   :  { %911 = vmatpush.bf16.msrb.mxu2 %v1539_v20  ;;  %v1591_v1 = vor.u32 %v1870_v56, %v1588_v57  ;;  %v1384_v3 = vld [vmem:[#allocation10 + $0x84] sm:$0xf0]  ;;  %v1867_v4 = vld [vmem:[#allocation10 + $0x1fc] sm:$0xf]  ;;  %v1483_v7 = vor.u32 %v1843_v62, %v1480_v63  ;;  %v1840_v8 = vld [vmem:[#allocation10 + $0x124] sm:$0xf] }
  0x3c   :  { %923 = vmatpush.bf16.msra.mxu3 %v1647_v44  ;;  %v1576_v5 = vld [vmem:[#allocation10 + $0x204] sm:$0xf0]  ;;  %v1468_v9 = vld [vmem:[#allocation10 + $0x12c] sm:$0xf0]  ;;  %v1387_v10 = vor.u32 %v1819_v2, %v1384_v3  ;;  %v1816_v12 = vld [vmem:[#allocation10 + $0x64] sm:$0xf] }
  0x3d   :  { %899 = vmatpush.bf16.msrb.mxu1 %v1431_v25  ;;  %v1579_v11 = vor.u32 %v1867_v4, %v1576_v5  ;;  %v1372_v13 = vld [vmem:[#allocation10 + $0x6c] sm:$0xf0]  ;;  %v1864_v14 = vld [vmem:[#allocation10 + $0x1e4] sm:$0xf]  ;;  %v1471_v16 = vor.u32 %v1840_v8, %v1468_v9  ;;  %v1837_v17 = vld [vmem:[#allocation10 + $0x10c] sm:$0xf] }
  0x3e   :  { %886 = vmatpush.bf16.msra.mxu0 %v1335_v34  ;;  %v1564_v15 = vld [vmem:[#allocation10 + $0x1ec] sm:$0xf0]  ;;  %v1456_v18 = vld [vmem:[#allocation10 + $0x114] sm:$0xf0]  ;;  %v1375_v19 = vor.u32 %v1816_v12, %v1372_v13  ;;  %v1834_v22 = vld [vmem:[#allocation10 + $0xf4] sm:$0xf] }
  0x3f   :  { %912 = vmatpush.bf16.msrb.mxu2 %v1527_v35  ;;  %v1567_v20 = vor.u32 %v1864_v14, %v1564_v15  ;;  %v1459_v21 = vor.u32 %v1837_v17, %v1456_v18  ;;  %v1444_v23 = vld [vmem:[#allocation10 + $0xfc] sm:$0xf0]  ;;  %v1877_v26 = vld [vmem:[#allocation10 + $0x248] sm:$0xf0]  ;;  %v1360_v29 = vld [vmem:[#allocation10 + $0x54] sm:$0xf0] }
  0x40   :  { %924 = vmatpush.bf16.msra.mxu3 %v1635_v58  ;;  %v1447_v24 = vor.u32 %v1834_v22, %v1444_v23  ;;  %v1610_v25 = vld [vmem:[#allocation10 + $0x240] sm:$0xf]  ;;  %v1813_v28 = vld [vmem:[#allocation10 + $0x4c] sm:$0xf]  ;;  %v1552_v33 = vld [vmem:[#allocation10 + $0x1d4] sm:$0xf0] }
  0x41   :  { %900 = vmatpush.bf16.msrb.mxu1 %v1419_v40  ;;  %v1611_v27 = vor.u32 %v1877_v26, %v1610_v25  ;;  %v1861_v30 = vld [vmem:[#allocation10 + $0x1cc] sm:$0xf]  ;;  %v1363_v31 = vor.u32 %v1813_v28, %v1360_v29  ;;  %v1696_v35 = vld [vmem:[#allocation10 + $0x2f4] sm:$0xf0]  ;;  %v1831_v32 = vld [vmem:[#allocation10 + $0xdc] sm:$0xf] }
  0x42   :  { %887 = vmatpush.bf16.msra.mxu0 %v1323_v50  ;;  %v1897_v34 = vld [vmem:[#allocation10 + $0x2ec] sm:$0xf]  ;;  %v1555_v36 = vor.u32 %v1861_v30, %v1552_v33  ;;  %v1432_v38 = vld [vmem:[#allocation10 + $0xe4] sm:$0xf0]  ;;  %v1810_v40 = vld [vmem:[#allocation10 + $0x34] sm:$0xf] }
  0x43   :  { %913 = vmatpush.bf16.msrb.mxu2 %v1515_v51  ;;  %v1699_v37 = vor.u32 %v1897_v34, %v1696_v35  ;;  %v1435_v39 = vor.u32 %v1831_v32, %v1432_v38  ;;  %v1348_v41 = vld [vmem:[#allocation10 + $0x3c] sm:$0xf0]  ;;  %v1858_v42 = vld [vmem:[#allocation10 + $0x1b4] sm:$0xf]  ;;  %v1828_v49 = vld [vmem:[#allocation10 + $0xc4] sm:$0xf] }
  0x44   :  { %925 = vmatpush.bf16.msra.mxu3 %v1623_v6  ;;  %v1351_v43 = vor.u32 %v1810_v40, %v1348_v41  ;;  %v1540_v44 = vld [vmem:[#allocation10 + $0x1bc] sm:$0xf0]  ;;  %v1420_v50 = vld [vmem:[#allocation10 + $0xcc] sm:$0xf0]  ;;  %v1855_v54 = vld [vmem:[#allocation10 + $0x19c] sm:$0xf] }
  0x45   :  { %945 = vmatpush.bf16.msra.mxu1 %v1507_v45  ;;  %v1894_v45 = vld [vmem:[#allocation10 + $0x2d4] sm:$0xf]  ;;  %v1684_v46 = vld [vmem:[#allocation10 + $0x2dc] sm:$0xf0]  ;;  %v1543_v47 = vor.u32 %v1858_v42, %v1540_v44  ;;  %v1423_v51 = vor.u32 %v1828_v49, %v1420_v50  ;;  %v1528_v56 = vld [vmem:[#allocation10 + $0x1a4] sm:$0xf0] }
  0x46   :  { %932 = vmatpush.bf16.msrb.mxu0 %v1411_v52  ;;  %v1687_v48 = vor.u32 %v1894_v45, %v1684_v46  ;;  %v1807_v52 = vld [vmem:[#allocation10 + $0x1c] sm:$0xf]  ;;  %v1672_v58 = vld [vmem:[#allocation10 + $0x2c4] sm:$0xf0]  ;;  %v1804_v61 = vld [vmem:[#allocation10 + $0x4] sm:$0xf] }
  0x47   :  { %958 = vmatpush.bf16.msra.mxu2 %v1603_v53  ;;  %v1336_v53 = vld [vmem:[#allocation10 + $0x24] sm:$0xf0]  ;;  %v1891_v57 = vld [vmem:[#allocation10 + $0x2bc] sm:$0xf]  ;;  %v1324_v62 = vld [vmem:[#allocation10 + $0xc] sm:$0xf0] }
  0x48   :  { %926 = vmatpush.bf16.msra.mxu3 %v1611_v27  ;;  %v1339_v55 = vor.u32 %v1807_v52, %v1336_v53  ;;  %v1675_v60 = vor.u32 %v1891_v57, %v1672_v58  ;;  %v1852_v63 = vld [vmem:[#allocation10 + $0x184] sm:$0xf]  ;;  %v1660_v3 = vld [vmem:[#allocation10 + $0x2ac] sm:$0xf0]  ;;  %v1885_v6 = vld [vmem:[#allocation10 + $0x28c] sm:$0xf] }
  0x49   :  { %946 = vmatpush.bf16.msra.mxu1 %v1495_v59  ;;  %v1531_v59 = vor.u32 %v1855_v54, %v1528_v56  ;;  %v1888_v2 = vld [vmem:[#allocation10 + $0x2a4] sm:$0xf]  ;;  %v1882_v9 = vld [vmem:[#allocation10 + $0x274] sm:$0xf]  ;;  %v1879_v12 = vld [vmem:[#allocation10 + $0x25c] sm:$0xf] }
  0x4a   :  { %933 = vmatpush.bf16.msrb.mxu0 %v1399_v0  ;;  %v1327_v0 = vor.u32 %v1804_v61, %v1324_v62  ;;  %v1663_v5 = vor.u32 %v1888_v2, %v1660_v3  ;;  %v1624_v13 = vld [vmem:[#allocation10 + $0x264] sm:$0xf0]  ;;  %v2214_v15 = vld [vmem:[#allocation8] sm:$0xf]  ;;  %v1612_v17 = vld [vmem:[#allocation10 + $0x24c] sm:$0xf0] }
  0x4b   :  { %959 = vmatpush.bf16.msra.mxu2 %v1591_v1  ;;  %v1516_v1 = vld [vmem:[#allocation10 + $0x18c] sm:$0xf0]  ;;  %v1627_v14 = vor.u32 %v1879_v12, %v1624_v13  ;;  %v1851_v23 = vld [vmem:[#allocation10 + $0x178] sm:$0xf0]  ;;  %v140_v25 = vperm.slane %v2214_v15, 0  ;;  %v142_v26 = vperm.slane %v2214_v15, 2 }
  0x4c   :  { %971 = vmatpush.bf16.msrb.mxu3 %v1699_v37  ;;  %v1519_v4 = vor.u32 %v1852_v63, %v1516_v1  ;;  %v1510_v22 = vld [vmem:[#allocation10 + $0x170] sm:$0xf]  ;;  %v1498_v29 = vld [vmem:[#allocation10 + $0x158] sm:$0xf]  ;;  %v1848_v30 = vld [vmem:[#allocation10 + $0x160] sm:$0xf0] }
  0x4d   :  { %947 = vmatpush.bf16.msra.mxu1 %v1483_v7  ;;  %v1648_v7 = vld [vmem:[#allocation10 + $0x294] sm:$0xf0]  ;;  %v1511_v27 = vor.u32 %v1851_v23, %v1510_v22  ;;  %v1414_v35 = vld [vmem:[#allocation10 + $0xb0] sm:$0xf]  ;;  %v1499_v32 = vor.u32 %v1848_v30, %v1498_v29  ;;  %v1486_v42 = vld [vmem:[#allocation10 + $0x140] sm:$0xf] }
  0x4e   :  { %934 = vmatpush.bf16.msrb.mxu0 %v1387_v10  ;;  %v1651_v8 = vor.u32 %v1885_v6, %v1648_v7  ;;  %v1636_v10 = vld [vmem:[#allocation10 + $0x27c] sm:$0xf0]  ;;  %v1606_v38 = vld [vmem:[#allocation10 + $0x230] sm:$0xf]  ;;  %v1824_v49 = vld [vmem:[#allocation10 + $0xa0] sm:$0xf0] }
  0x4f   :  { %960 = vmatpush.bf16.msra.mxu2 %v1579_v11  ;;  %v1639_v11 = vor.u32 %v1882_v9, %v1636_v10  ;;  %v1594_v52 = vld [vmem:[#allocation10 + $0x218] sm:$0xf]  ;;  %v1872_v53 = vld [vmem:[#allocation10 + $0x220] sm:$0xf0]  ;;  %v1474_v54 = vld [vmem:[#allocation10 + $0x128] sm:$0xf] }
  0x50   :  { %972 = vmatpush.bf16.msrb.mxu3 %v1687_v48  ;;  %v1402_v48 = vld [vmem:[#allocation10 + $0x98] sm:$0xf]  ;;  %v1595_v58 = vor.u32 %v1872_v53, %v1594_v52  ;;  %v1821_v61 = vld [vmem:[#allocation10 + $0x88] sm:$0xf0]  ;;  %v1582_v63 = vld [vmem:[#allocation10 + $0x200] sm:$0xf] }
  0x51   :  { %948 = vmatpush.bf16.msra.mxu1 %v1471_v16  ;;  %v1876_v16 = vld [vmem:[#allocation10 + $0x244] sm:$0xf]  ;;  %v1403_v57 = vor.u32 %v1824_v49, %v1402_v48  ;;  %v1462_v1 = vld [vmem:[#allocation10 + $0x110] sm:$0xf]  ;;  %v1839_v2 = vld [vmem:[#allocation10 + $0x118] sm:$0xf0] }
  0x52   :  { %935 = vmatpush.bf16.msrb.mxu0 %v1375_v19  ;;  %v1615_v18 = vor.u32 %v1876_v16, %v1612_v17  ;;  %v141_v19 = vperm.slane %v2214_v15, 1  ;;  %v1378_v6 = vld [vmem:[#allocation10 + $0x68] sm:$0xf]  ;;  %v1818_v7 = vld [vmem:[#allocation10 + $0x70] sm:$0xf0]  ;;  %s1287_s25 = sshll.u32 %s2258_s9, 4  ;;  %s1288_s25 = int_to_ptr.hbm [resolvable:$true] %s1287_s25 }
  0x53   :  { %961 = vmatpush.bf16.msra.mxu2 %v1567_v20  ;;  %v1570_v9 = vld [vmem:[#allocation10 + $0x1e8] sm:$0xf]  ;;  %v1866_v10 = vld [vmem:[#allocation10 + $0x1f0] sm:$0xf0]  ;;  %v1836_v12 = vld [vmem:[#allocation10 + $0x100] sm:$0xf0] }
  0x54   :  { %973 = vmatpush.bf16.msrb.mxu3 %v1675_v60  ;;  %v1390_v60 = vld [vmem:[#allocation10 + $0x80] sm:$0xf]  ;;  %v1571_v17 = vor.u32 %v1866_v10, %v1570_v9  ;;  %v1702_v22 = vld [vmem:[#allocation10 + $0x2f0] sm:$0xf]  ;;  %v1899_v23 = vld [vmem:[#allocation10 + $0x2f8] sm:$0xf0] }
  0x55   :  { %949 = vmatpush.bf16.msra.mxu1 %v1459_v21  ;;  %v1391_v3 = vor.u32 %v1821_v61, %v1390_v60  ;;  %v1534_v48 = vld [vmem:[#allocation10 + $0x1a0] sm:$0xf]  ;;  %v1893_v53 = vld [vmem:[#allocation10 + $0x2c8] sm:$0xf0]  ;;  %v1854_v60 = vld [vmem:[#allocation10 + $0x190] sm:$0xf0] }
  0x56   :  { %936 = vmatpush.bf16.msrb.mxu0 %v1363_v31  ;;  %v1678_v52 = vld [vmem:[#allocation10 + $0x2c0] sm:$0xf]  ;;  %v1666_v61 = vld [vmem:[#allocation10 + $0x2a8] sm:$0xf]  ;;  %v1881_v9 = vld [vmem:[#allocation10 + $0x268] sm:$0xf0] }
  0x57   :  { %962 = vmatpush.bf16.msra.mxu2 %v1555_v36  ;;  %v1827_v36 = vld [vmem:[#allocation10 + $0xb8] sm:$0xf0]  ;;  %v1618_v10 = vld [vmem:[#allocation10 + $0x248] sm:$0xf] }
  0x58   :  { %974 = vmatpush.bf16.msrb.mxu3 %v1663_v5  ;;  %v1415_v45 = vor.u32 %v1827_v36, %v1414_v35  ;;  %v1546_v35 = vld [vmem:[#allocation10 + $0x1b8] sm:$0xf] }
  0x59   :  { %950 = vmatpush.bf16.msra.mxu1 %v1447_v24 }
  0x5a   :  { %937 = vmatpush.bf16.msrb.mxu0 %v1351_v43  ;;  %v1845_v43 = vld [vmem:[#allocation10 + $0x148] sm:$0xf0] }
  0x5b   :  { %963 = vmatpush.bf16.msra.mxu2 %v1543_v47 }
  0x5c   :  { %975 = vmatpush.bf16.msrb.mxu3 %v1651_v8  ;;  %v1463_v8 = vor.u32 %v1839_v2, %v1462_v1  ;;  %v1654_v2 = vld [vmem:[#allocation10 + $0x290] sm:$0xf] }
  0x5d   :  { %951 = vmatpush.bf16.msra.mxu1 %v1435_v39  ;;  %v1875_v39 = vld [vmem:[#allocation10 + $0x238] sm:$0xf0] }
  0x5e   :  { %938 = vmatpush.bf16.msrb.mxu0 %v1339_v55  ;;  %v1607_v47 = vor.u32 %v1875_v39, %v1606_v38  ;;  %v1842_v55 = vld [vmem:[#allocation10 + $0x130] sm:$0xf0]  ;;  %v1896_v38 = vld [vmem:[#allocation10 + $0x2e0] sm:$0xf0]  ;;  %v1426_v39 = vld [vmem:[#allocation10 + $0xc8] sm:$0xf] }
  0x5f   :  { %964 = vmatpush.bf16.msra.mxu2 %v1531_v59  ;;  %v1475_v62 = vor.u32 %v1842_v55, %v1474_v54 }
  0x60   :  { %976 = vmatpush.bf16.msrb.mxu3 %v1639_v11  ;;  %v1450_v11 = vld [vmem:[#allocation10 + $0xf8] sm:$0xf] }
  0x61   :  { %952 = vmatpush.bf16.msra.mxu1 %v1423_v51  ;;  %v1487_v51 = vor.u32 %v1845_v43, %v1486_v42 }
  0x62   :  { %939 = vmatpush.bf16.msrb.mxu0 %v1327_v0  ;;  %v1869_v0 = vld [vmem:[#allocation10 + $0x208] sm:$0xf0] }
  0x63   :  { %965 = vmatpush.bf16.msra.mxu2 %v1519_v4  ;;  %v143_v4 = vperm.slane %v2214_v15, 3  ;;  %v1583_v5 = vor.u32 %v1869_v0, %v1582_v63  ;;  %v1558_v15 = vld [vmem:[#allocation10 + $0x1d0] sm:$0xf] }
  0x64   :  { %977 = vmatpush.bf16.msrb.mxu3 %v1627_v14  ;;  %v1379_v14 = vor.u32 %v1818_v7, %v1378_v6  ;;  %v1884_v6 = vld [vmem:[#allocation10 + $0x280] sm:$0xf0] }
  0x68   :  { %978 = vmatpush.bf16.msrb.mxu3 %v1615_v18  ;;  %v1366_v18 = vld [vmem:[#allocation10 + $0x50] sm:$0xf] }
  0xa5   :  { %v194_v20 = vpop.f32.mrf.mxu1 }
  0xa6   :  { %v195_v21 = vadd.f32 %v194_v20, %v141_v19  ;;  %v1815_v19 = vld [vmem:[#allocation10 + $0x58] sm:$0xf0]  ;;  %v1451_v20 = vor.u32 %v1836_v12, %v1450_v11  ;;  %v1878_v11 = vld [vmem:[#allocation10 + $0x250] sm:$0xf0] }
  0xa7   :  { %v1619_v12 = vor.u32 %v1878_v11, %v1618_v10 }
  0xa8   :  { %v225_v24 = vmax.f32 %v195_v21, 0.0  ;;  %v1863_v21 = vld [vmem:[#allocation10 + $0x1d8] sm:$0xf0] }
  0xa9   :  { %v1559_v30 = vor.u32 %v1863_v21, %v1558_v15  ;;  %v1901_v15 = vld [vmem:[#allocation11 + $0x8] sm:$0xff]  ;;  %v1900_v21 = vld [vmem:[#allocation11] sm:$0xff] }
  0xaa   :  { %v2219_v28 = vpack.c.bf16 %v225_v24, %v225_v24  ;;  %v181_v31 = vpop.f32.mrf.mxu3 }
  0xab   :  { %v182_v33 = vadd.f32 %v181_v31, %v140_v25  ;;  %v207_v34 = vpop.f32.mrf.mxu2  ;;  %v1438_v25 = vld [vmem:[#allocation10 + $0xe0] sm:$0xf]  ;;  %v1703_v31 = vor.u32 %v1899_v23, %v1702_v22 }
  0xac   :  { %901 = vmatmul.bf16.vlgmr.msrb.gmra.mxu1 %v2219_v28  ;;  %v208_v37 = vadd.f32 %v207_v34, %v142_v26  ;;  %v1833_v26 = vld [vmem:[#allocation10 + $0xe8] sm:$0xf0]  ;;  %v1812_v34 = vld [vmem:[#allocation10 + $0x40] sm:$0xf0] }
  0xad   :  { %997 = vmatpush.bf16.msrb.mxu1 %v1511_v27  ;;  %v196_v40 = vpop.f32.mrf.mxu1  ;;  %v224_v41 = vmax.f32 %v182_v33, 0.0  ;;  %v1367_v27 = vor.u32 %v1815_v19, %v1366_v18  ;;  %v1354_v33 = vld [vmem:[#allocation10 + $0x38] sm:$0xf]  ;;  %v1439_v36 = vor.u32 %v1833_v26, %v1438_v25  ;;  %v1902_v18 = vld [vmem:[#allocation11 + $0x10] sm:$0xff]  ;;  %v1912_v22 = vld [vmem:[#allocation11 + $0x60] sm:$0xff] }
  0xae   :  { %v226_v44 = vmax.f32 %v208_v37, 0.0  ;;  %v1860_v37 = vld [vmem:[#allocation10 + $0x1c0] sm:$0xf0]  ;;  %v1830_v40 = vld [vmem:[#allocation10 + $0xd0] sm:$0xf0]  ;;  %v1355_v42 = vor.u32 %v1812_v34, %v1354_v33  ;;  %v1923_v25 = vld [vmem:[#allocation11 + $0xb8] sm:$0xff] }
  0xaf   :  { %v2222_v46 = vpack.c.bf16 %v224_v41, %v224_v41  ;;  %v1547_v43 = vor.u32 %v1860_v37, %v1546_v35  ;;  %v1427_v49 = vor.u32 %v1830_v40, %v1426_v39  ;;  %v1914_v19 = vld [vmem:[#allocation11 + $0x70] sm:$0xff]  ;;  %v1921_v33 = vld [vmem:[#allocation11 + $0xa8] sm:$0xff]  ;;  %v1908_v37 = vld [vmem:[#allocation11 + $0x40] sm:$0xff] }
  0xb0   :  { %v2224_v50 = vpack.c.bf16 %v226_v44, %v226_v44  ;;  %v360_v35 = vld [vmem:[%s2255_s6] sm:$0x7]  ;;  %v1919_v40 = vld [vmem:[#allocation11 + $0x98] sm:$0xff] }
  0xb1   :  { %998 = vmatpush.bf16.msrb.mxu1 %v1499_v32  ;;  %888 = vmatmul.bf16.vlgmr.msra.gmra.mxu0 %v2222_v46  ;;  %v1690_v32 = vld [vmem:[#allocation10 + $0x2d8] sm:$0xf]  ;;  %v362_v39 = vperm.slane %v360_v35, 0 }
  0xb2   :  { %914 = vmatmul.bf16.vlgmr.msrb.gmra.mxu2 %v2224_v50  ;;  %v183_v56 = vpop.f32.mrf.mxu3  ;;  %984 = vmatpush.bf16.msra.mxu0 %v1415_v45  ;;  %v1691_v44 = vor.u32 %v1896_v38, %v1690_v32  ;;  %v1342_v45 = vld [vmem:[#allocation10 + $0x20] sm:$0xf] }
  0xb3   :  { %1010 = vmatpush.bf16.msrb.mxu2 %v1607_v47  ;;  %v209_v59 = vpop.f32.mrf.mxu2  ;;  %v1809_v47 = vld [vmem:[#allocation10 + $0x28] sm:$0xf0]  ;;  %v1679_v56 = vor.u32 %v1893_v53, %v1678_v52  ;;  %v1920_v32 = vld [vmem:[#allocation11 + $0xa0] sm:$0xff] }
  0xb4   :  { %v1343_v54 = vor.u32 %v1809_v47, %v1342_v45  ;;  %v1522_v59 = vld [vmem:[#allocation10 + $0x188] sm:$0xf] }
  0xb5   :  { %999 = vmatpush.bf16.msrb.mxu1 %v1487_v51  ;;  %v1857_v51 = vld [vmem:[#allocation10 + $0x1a8] sm:$0xf0]  ;;  %v1523_v0 = vor.u32 %v1854_v60, %v1522_v59 }
  0xb6   :  { %985 = vmatpush.bf16.msra.mxu0 %v1403_v57  ;;  %v1535_v55 = vor.u32 %v1857_v51, %v1534_v48  ;;  %v1330_v57 = vld [vmem:[#allocation10 + $0x8] sm:$0xf] }
  0xb7   :  { %1011 = vmatpush.bf16.msrb.mxu2 %v1595_v58  ;;  %v1806_v58 = vld [vmem:[#allocation10 + $0x10] sm:$0xf0] }
  0xb8   :  { %v1331_v63 = vor.u32 %v1806_v58, %v1330_v57  ;;  %v363_v57 = vperm.slane %v360_v35, 1 }
  0xb9   :  { %1000 = vmatpush.bf16.msrb.mxu1 %v1475_v62  ;;  %v1890_v62 = vld [vmem:[#allocation10 + $0x2b0] sm:$0xf0] }
  0xba   :  { %v220_v13 = vpop.f32.mrf.mxu3  ;;  %986 = vmatpush.bf16.msra.mxu0 %v1391_v3  ;;  %v1667_v1 = vor.u32 %v1890_v62, %v1666_v61  ;;  %v1887_v3 = vld [vmem:[#allocation10 + $0x298] sm:$0xf0] }
  0xbb   :  { %v221_v16 = vadd.f32 %v220_v13, %v143_v4  ;;  %1012 = vmatpush.bf16.msrb.mxu2 %v1583_v5  ;;  %v1655_v4 = vor.u32 %v1887_v3, %v1654_v2  ;;  %v1642_v5 = vld [vmem:[#allocation10 + $0x278] sm:$0xf] }
  0xbc   :  { %953 = vmatmul.bf16.vlgmr.msra.gmra.mxu1 %v2219_v28  ;;  %v1643_v7 = vor.u32 %v1884_v6, %v1642_v5  ;;  %v1907_v13 = vld [vmem:[#allocation11 + $0x38] sm:$0xff] }
  0xbd   :  { %1001 = vmatpush.bf16.msrb.mxu1 %v1463_v8  ;;  %v227_v24 = vmax.f32 %v221_v16, 0.0  ;;  %v1630_v8 = vld [vmem:[#allocation10 + $0x260] sm:$0xf]  ;;  %v1903_v16 = vld [vmem:[#allocation11 + $0x18] sm:$0xff] }
  0xbe   :  { %987 = vmatpush.bf16.msra.mxu0 %v1379_v14  ;;  %v1906_v14 = vld [vmem:[#allocation11 + $0x30] sm:$0xff] }
  0xbf   :  { %v2230_v29 = vpack.c.bf16 %v227_v24, %v227_v24  ;;  %1013 = vmatpush.bf16.msrb.mxu2 %v1571_v17  ;;  %v1915_v17 = vld [vmem:[#allocation11 + $0x78] sm:$0xff] }
  0xc0   :  { %v1911_v24 = vld [vmem:[#allocation11 + $0x58] sm:$0xff] }
  0xc1   :  { %1002 = vmatpush.bf16.msrb.mxu1 %v1451_v20  ;;  %927 = vmatmul.bf16.vlgmr.msra.gmra.mxu3 %v2230_v29  ;;  %v1913_v20 = vld [vmem:[#allocation11 + $0x68] sm:$0xff] }
  0xc2   :  { %940 = vmatmul.bf16.vlgmr.msrb.gmra.mxu0 %v2222_v46  ;;  %966 = vmatmul.bf16.vlgmr.msra.gmra.mxu2 %v2224_v50  ;;  %v222_v41 = vpop.f32.mrf.mxu3 }
  0xc3   :  { %988 = vmatpush.bf16.msra.mxu0 %v1367_v27  ;;  %1014 = vmatpush.bf16.msrb.mxu2 %v1559_v30  ;;  %v1910_v27 = vld [vmem:[#allocation11 + $0x50] sm:$0xff] }
  0xc4   :  { %1023 = vmatpush.bf16.msra.mxu3 %v1703_v31  ;;  %v1909_v31 = vld [vmem:[#allocation11 + $0x48] sm:$0xff] }
  0xc5   :  { %1003 = vmatpush.bf16.msrb.mxu1 %v1439_v36 }
  0xc7   :  { %989 = vmatpush.bf16.msra.mxu0 %v1355_v42  ;;  %1015 = vmatpush.bf16.msrb.mxu2 %v1547_v43  ;;  %v1918_v43 = vld [vmem:[#allocation11 + $0x90] sm:$0xff] }
  0xc8   :  { %1024 = vmatpush.bf16.msra.mxu3 %v1691_v44 }
  0xc9   :  { %1004 = vmatpush.bf16.msrb.mxu1 %v1427_v49  ;;  %v1917_v49 = vld [vmem:[#allocation11 + $0x88] sm:$0xff] }
  0xcb   :  { %990 = vmatpush.bf16.msra.mxu0 %v1343_v54  ;;  %1016 = vmatpush.bf16.msrb.mxu2 %v1535_v55 }
  0xcc   :  { %1025 = vmatpush.bf16.msra.mxu3 %v1679_v56  ;;  %1005 = vmatmul.bf16.vlgmr.msrb.gmra.mxu1 %v2219_v28  ;;  %v1631_v28 = vor.u32 %v1881_v9, %v1630_v8  ;;  %v1916_v56 = vld [vmem:[#allocation11 + $0x80] sm:$0xff]  ;;  %v364_v9 = vperm.slane %v360_v35, 2 }
  0xcd   :  { %1251 = vmatpush.bf16.msra.mxu1 %v1915_v17 }
  0xcf   :  { %991 = vmatpush.bf16.msra.mxu0 %v1331_v63  ;;  %1017 = vmatpush.bf16.msrb.mxu2 %v1523_v0 }
  0xd0   :  { %1026 = vmatpush.bf16.msra.mxu3 %v1667_v1 }
  0xd1   :  { %979 = vmatmul.bf16.vlgmr.msrb.gmra.mxu3 %v2230_v29  ;;  %1252 = vmatpush.bf16.msra.mxu1 %v1914_v19 }
  0xd2   :  { %992 = vmatmul.bf16.vlgmr.msra.gmra.mxu0 %v2222_v46  ;;  %1018 = vmatmul.bf16.vlgmr.msrb.gmra.mxu2 %v2224_v50  ;;  %v1905_v46 = vld [vmem:[#allocation11 + $0x28] sm:$0xff]  ;;  %v1904_v50 = vld [vmem:[#allocation11 + $0x20] sm:$0xff] }
  0xd3   :  { %1238 = vmatpush.bf16.msrb.mxu0 %v1907_v13  ;;  %1264 = vmatpush.bf16.msra.mxu2 %v1923_v25 }
  0xd4   :  { %1027 = vmatpush.bf16.msra.mxu3 %v1655_v4 }
  0xd5   :  { %1253 = vmatpush.bf16.msra.mxu1 %v1913_v20 }
  0xd7   :  { %1239 = vmatpush.bf16.msrb.mxu0 %v1906_v14 }
  0xd8   :  { %1028 = vmatpush.bf16.msra.mxu3 %v1643_v7 }
  0xd9   :  { %1254 = vmatpush.bf16.msra.mxu1 %v1912_v22 }
  0xdb   :  { %1240 = vmatpush.bf16.msrb.mxu0 %v1905_v46 }
  0xdc   :  { %1029 = vmatpush.bf16.msra.mxu3 %v1631_v28 }
  0xdd   :  { %1255 = vmatpush.bf16.msra.mxu1 %v1911_v24 }
  0xdf   :  { %1241 = vmatpush.bf16.msrb.mxu0 %v1904_v50 }
  0xe0   :  { %1030 = vmatpush.bf16.msra.mxu3 %v1619_v12 }
  0xe1   :  { %1256 = vmatpush.bf16.msra.mxu1 %v1910_v27 }
  0xe3   :  { %1031 = vmatmul.bf16.vlgmr.msra.gmra.mxu3 %v2230_v29  ;;  %1242 = vmatpush.bf16.msrb.mxu0 %v1903_v16  ;;  %v1922_v29 = vld [vmem:[#allocation11 + $0xb0] sm:$0xff] }
  0xe4   :  { %1265 = vmatpush.bf16.msra.mxu2 %v1922_v29 }
  0xe5   :  { %1257 = vmatpush.bf16.msra.mxu1 %v1909_v31 }
  0xe7   :  { %1243 = vmatpush.bf16.msrb.mxu0 %v1902_v18 }
  0xe8   :  { %1266 = vmatpush.bf16.msra.mxu2 %v1921_v33 }
  0xe9   :  { %1258 = vmatpush.bf16.msra.mxu1 %v1908_v37 }
  0xeb   :  { %1244 = vmatpush.bf16.msrb.mxu0 %v1901_v15 }
  0xec   :  { %1267 = vmatpush.bf16.msra.mxu2 %v1920_v32 }
  0xef   :  { %1245 = vmatpush.bf16.msrb.mxu0 %v1900_v21  ;;  %v1939_v21 = vld [vmem:[%s2257_s8] ss:$0 sm:$0xff] }
  0xf0   :  { %1268 = vmatpush.bf16.msra.mxu2 %v1919_v40 }
  0xf4   :  { %1269 = vmatpush.bf16.msra.mxu2 %v1918_v43 }
  0xf8   :  { %1270 = vmatpush.bf16.msra.mxu2 %v1917_v49 }
  0xfc   :  { %1271 = vmatpush.bf16.msra.mxu2 %v1916_v56 }
 0x129   :  { %v902_v23 = vpop.f32.mrf.mxu1 }
 0x12e   :  { %v889_v26 = vpop.f32.mrf.mxu0 }
 0x12f   :  { %v890_v41 = vadd.f32 %v889_v26, %v362_v39 }
 0x131   :  { %v904_v30 = vpop.f32.mrf.mxu1  ;;  %v903_v47 = vadd.f32 %v902_v23, %v890_v41 }
 0x135   :  { %v915_v34 = vpop.f32.mrf.mxu2 }
 0x136   :  { %v891_v36 = vpop.f32.mrf.mxu0  ;;  %v916_v48 = vadd.f32 %v915_v34, %v903_v47 }
 0x139   :  { %v954_v38 = vpop.f32.mrf.mxu1 }
 0x13d   :  { %v917_v42 = vpop.f32.mrf.mxu2 }
 0x13f   :  { %v941_v44 = vpop.f32.mrf.mxu0 }
 0x140   :  { %v942_v61 = vadd.f32 %v941_v44, %v363_v57 }
 0x141   :  { %v956_v45 = vpop.f32.mrf.mxu1 }
 0x142   :  { %v955_v0 = vadd.f32 %v954_v38, %v942_v61 }
 0x144   :  { %v928_v51 = vpop.f32.mrf.mxu3 }
 0x145   :  { %v929_v52 = vadd.f32 %v928_v51, %v916_v48  ;;  %v967_v53 = vpop.f32.mrf.mxu2 }
 0x146   :  { %v968_v2 = vadd.f32 %v967_v53, %v955_v0 }
 0x147   :  { %v943_v54 = vpop.f32.mrf.mxu0  ;;  %v1036_v55 = vmax.f32 %v929_v52, 0.0 }
 0x149   :  { %v1039_v58 = vpack.c.bf16 %v1036_v55, %v1036_v55  ;;  %v1006_v59 = vpop.f32.mrf.mxu1 }
 0x14b   :  { %1246 = vmatmul.bf16.vlgmr.msrb.gmra.mxu0 %v1039_v58 }
 0x14c   :  { %v930_v60 = vpop.f32.mrf.mxu3 }
 0x14d   :  { %v969_v62 = vpop.f32.mrf.mxu2 }
 0x14f   :  { %v993_v63 = vpop.f32.mrf.mxu0 }
 0x150   :  { %v994_v11 = vadd.f32 %v993_v63, %v364_v9 }
 0x151   :  { %v1008_v1 = vpop.f32.mrf.mxu1 }
 0x152   :  { %v1007_v12 = vadd.f32 %v1006_v59, %v994_v11 }
 0x154   :  { %v980_v3 = vpop.f32.mrf.mxu3 }
 0x155   :  { %v981_v4 = vadd.f32 %v980_v3, %v968_v2  ;;  %v1019_v5 = vpop.f32.mrf.mxu2 }
 0x156   :  { %v1020_v13 = vadd.f32 %v1019_v5, %v1007_v12 }
 0x157   :  { %v995_v6 = vpop.f32.mrf.mxu0  ;;  %v1037_v7 = vmax.f32 %v981_v4, 0.0 }
 0x159   :  { %v1040_v8 = vpack.c.bf16 %v1037_v7, %v1037_v7 }
 0x15b   :  { %1259 = vmatmul.bf16.vlgmr.msra.gmra.mxu1 %v1040_v8 }
 0x15c   :  { %v982_v28 = vpop.f32.mrf.mxu3 }
 0x15d   :  { %v1021_v10 = vpop.f32.mrf.mxu2 }
 0x166   :  { %v1032_v14 = vpop.f32.mrf.mxu3 }
 0x167   :  { %v1033_v46 = vadd.f32 %v1032_v14, %v1020_v13 }
 0x169   :  { %v1038_v50 = vmax.f32 %v1033_v46, 0.0 }
 0x16b   :  { %v1041_v16 = vpack.c.bf16 %v1038_v50, %v1038_v50 }
 0x16d   :  { %1272 = vmatmul.bf16.vlgmr.msra.gmra.mxu2 %v1041_v16 }
 0x16e   :  { %v1034_v17 = vpop.f32.mrf.mxu3 }
 0x1c8   :  { %v1247_v18 = vpop.f32.mrf.mxu0 }
 0x1c9   :  { %v1248_v22 = vadd.f32 %v1939_v21, %v1247_v18 }
 0x1d0   :  { %v1249_v19 = vpop.f32.mrf.mxu0 }
 0x1d8   :  { %v1260_v15 = vpop.f32.mrf.mxu1 }
 0x1d9   :  { %v1261_v23 = vadd.f32 %v1260_v15, %v1248_v22 }
 0x1e0   :  { %v1262_v20 = vpop.f32.mrf.mxu1 }
 0x1f0   :  { %v1273_v24 = vpop.f32.mrf.mxu2 }
 0x1f1   :  { %v1274_v25 = vadd.f32 %v1273_v24, %v1261_v23 }
 0x1f3   :  { %1940 = vtanh.f32 %v1274_v25 }
 0x1f8   :  { %v1275_v26 = vpop.f32.mrf.mxu2 }
 0x1f9   :  { %v1941_v27 = vpop.eup %1940 }
 0x1fa   :  { %v1278_v29 = vmul.f32 2.0, %v1941_v27 }
 0x1fc   :  { %1279 = vst [vmem:[#allocation13] sm:$0xff] %v1278_v29 }
 0x1fd   :  { %1290 = dma.vmem_to_hbm [thread:$0]  %s1286_s22, 128, %s1288_s25, [#allocation4]  }
 0x1fe   :  { %2118 = dma.done.wait [#allocation4], 128  }
 0x1ff   :  { %2119 = vsyncadd [#allocation4], 4294967168 }
 0x200   :  { %1295 = vsyncpa [#allocation3], 1 }
 0x201   :  { %1296 = vsyncpa [#allocation6], 1 }
 0x202   :  { %1297 = vsyncpa [#allocation9], 1 }
 0x203   :  { %1298 = vsyncpa [#allocation12], 1 }
 0x204   :  { %1299 = vsyncpa [#allocation4], 1 }

</bundles_post_ra>
